<compile_context>
chip_gen: v7x
topology: tpu7x:2x2x1
jax: 0.10.0
libtpu: 0.0.40
codegen_flags: <defaults>
</compile_context>

<pallas_src>
import math
import numpy as np
import jax
import jax.numpy as jnp
from jax.experimental import pallas as pl
from jax.experimental.pallas import tpu as pltpu


# ----------------------------------------------------------------------------
# Parameter construction (pure numpy, deterministic) -- glue, not the hot path.
# Faithful translation of the torch helper functions in Layer2.__init__.
# ----------------------------------------------------------------------------
def _freqspace(N):
    f1 = (np.arange(N[0]) - math.floor(N[0] / 2)) * (2.0 / N[0])
    f2 = (np.arange(N[1]) - math.floor(N[1] / 2)) * (2.0 / N[1])
    F2, F1 = np.meshgrid(f1, f2, indexing="ij")  # torch.meshgrid default 'ij'
    return F1, F2


def _metefot(sec, foto, N, ma):
    fil, col = foto.shape
    Nfot = sec.shape[1] / col
    if N > Nfot:
        raise NotImplementedError("list-append branch never hit for Nt=1")
    elif ma == 1:
        sec = sec.copy()
        sec[:, (N - 1) * col : N * col] = foto
    return sec


def _spatio_temp_freq_domain(Ny, Nx, Nt, fsx, fsy, fst):
    int_x = Nx / fsx
    int_y = Ny / fsy
    int_t = Nt / fst
    x = np.zeros((Ny, Nx * Nt))
    y = np.zeros((Ny, Nx * Nt))
    t = np.zeros((Ny, Nx * Nt))
    fot_x = np.linspace(0.0, int_x, Nx + 1)[:-1]
    fot_x = np.tile(fot_x, (Ny, 1))
    fot_y = np.linspace(0.0, int_y, Ny + 1)[:-1]
    fot_y = np.tile(fot_y, (Nx, 1)).T
    fot_t = np.ones((Ny, Nx))
    val_t = np.linspace(0.0, int_t, Nt + 1)[:-1]
    for i in range(Nt):
        x = _metefot(x, fot_x, i + 1, 1)
        y = _metefot(y, fot_y, i + 1, 1)
        t = _metefot(t, val_t[i] * fot_t, i + 1, 1)
    fx, fy = _freqspace([Ny, Nx])
    fx = fx * fsx / 2
    fy = fy * fsy / 2
    ffx = np.zeros((Ny, Nx * Nt))
    ffy = np.zeros((Ny, Nx * Nt))
    ff_t = np.zeros((Ny, Nx * Nt))
    fot_t = np.ones((Ny, Nx))
    ft, _ = _freqspace([Nt, Nt])
    val_t = ft * fst / 2
    for i in range(Nt):
        ffx = _metefot(ffx, fx, i + 1, 1)
        ffy = _metefot(ffy, fy, i + 1, 1)
        ff_t = _metefot(ff_t, val_t.flatten()[i] * fot_t, i + 1, 1)
    return x, y, t, ffx, ffy, ff_t


def _make_2d_gauss_kernel(fs, N, sigma):
    d = N ** 2
    x, y, t, fx, fy, ft = _spatio_temp_freq_domain(N, N, 1, fs, fs, 1)
    dx = x[0, 1] - x[0, 0]
    X = np.tile(x.T, (1, d)).flatten().reshape(d, d)
    Y = np.tile(np.tile(y, (1, N)), (N, 1))
    Xotros = X.T
    Yotros = Y.T
    delta = (X - Xotros) ** 2 + (Y - Yotros) ** 2
    H = dx ** 2 * (1.0 / (2 * math.pi * sigma ** 2)) * np.exp(-delta / (2 * sigma ** 2))
    dHds = (
        dx ** 2
        * (1.0 / (math.pi * sigma ** 2))
        * ((delta - 2 * sigma ** 2) / (2 * sigma ** 3))
        * np.exp(-delta / (2 * sigma ** 2))
    )
    return H, dHds


_BIAS = 30.0  # b = ones(16, 1) * 30 -> constant scalar, folded into the kernel
_D = 16       # feature dimension of Layer2


def build_layer2_params():
    fs, N = 64, _D
    Ls, Hs, Hc = 0.066, 0.066, 1.0
    H1, _ = _make_2d_gauss_kernel(fs, int(np.sqrt(N)), Ls)
    H2, _ = _make_2d_gauss_kernel(fs, int(np.sqrt(N)), Hs)
    H = Hc * H2
    L = np.eye(N) - H1
    # Constant fold: iL = L^{-1}  =>  (H @ iL) @ (L @ x) == H @ x exactly,
    # so A = [L ; H] and no np.linalg.inv / M @ L product is needed.
    A = np.concatenate([L, H], axis=0)          # (2d, d)
    return jnp.asarray(A, dtype=jnp.float32), L, H


# ----------------------------------------------------------------------------
# Pallas kernel: one MXU push + lane-dense elementwise tail, two lane-dense
# output slabs (no sublane concatenation, no bias input).
# ----------------------------------------------------------------------------
def _make_layer2_kernel(d):
    def layer2_kernel(a_ref, xt_ref, yy_ref, xim_ref):
        # z = A @ XT_tile : (2d, d) @ (d, TB) -> (2d, TB) = [yy ; H @ yy]
        z = jnp.dot(a_ref[...], xt_ref[...], preferred_element_type=jnp.float32)
        yy = z[:d, :]
        hyy = z[d:, :]
        # exact reciprocal to hold the 1e-5 tolerance (approx=True would ride
        # the EUP slot for free but with reduced precision)
        xim = yy * pl.reciprocal(_BIAS + hyy, approx=False)
        yy_ref[...] = yy.astype(yy_ref.dtype)
        xim_ref[...] = xim.astype(xim_ref.dtype)

    return layer2_kernel


def layer2_forward_batched(A, xt, *, tb=256):
    """Batched Layer2 forward.

    A  : (2d, d) folded operand  [L ; H]
    xt : (d, B)  batch on the lane axis, B a multiple of `tb`
    returns (yy, xim), each (d, B)
    """
    d2, d = A.shape
    _, B = xt.shape
    if B % tb != 0:
        raise ValueError(f"batch {B} must be a multiple of the lane tile {tb}")

    grid = (B // tb,)
    return pl.pallas_call(
        _make_layer2_kernel(d),
        grid_spec=pltpu.PrefetchScalarGridSpec(
            num_scalar_prefetch=0,
            grid=grid,
            in_specs=[
                pl.BlockSpec((d2, d), lambda j: (0, 0)),   # A fully VMEM-resident
                pl.BlockSpec((d, tb), lambda j: (0, j)),   # batch tile on lanes
            ],
            out_specs=[
                pl.BlockSpec((d, tb), lambda j: (0, j)),
                pl.BlockSpec((d, tb), lambda j: (0, j)),
            ],
        ),
        out_shape=(
            jax.ShapeDtypeStruct((d, B), jnp.float32),
            jax.ShapeDtypeStruct((d, B), jnp.float32),
        ),
        compiler_params=pltpu.CompilerParams(
            dimension_semantics=("parallel",)  # megacore sharding on v7x
        ),
    )(A, xt)


def layer2_forward(A, x):
    """Module-faithful single-vector forward: x (d,) -> (yy (d,1), xim (d,1)).

    Pads the lane axis to 128 and reuses the batched kernel.
    """
    # TODO(synk): a standalone single-vector call is launch-overhead bound
    # (~1 KFLOP vs ~1 us of launch + DMAs); prefer the batched entry point or
    # fuse this layer into the surrounding kernel.
    d = A.shape[1]
    xt = jnp.zeros((d, 128), jnp.float32).at[:, 0].set(x.astype(jnp.float32))
    yy, xim = layer2_forward_batched(A, xt, tb=128)
    return yy[:, 0:1], xim[:, 0:1]


# ----------------------------------------------------------------------------
if __name__ == "__main__":
    A, L_np, H_np = build_layer2_params()

    key = jax.random.PRNGKey(0)
    B = 512                                             # small batched demo
    X = jax.random.normal(key, (B, _D), dtype=jnp.float32)   # B module inputs
    XT = X.T                                            # (d, B), batch on lanes

    yy_b, xim_b = layer2_forward_batched(A, XT, tb=256)
    jax.block_until_ready((yy_b, xim_b))

    # Reference: the original module chain (with the explicit inverse) in f64.
    L64 = np.asarray(L_np, np.float64)
    H64 = np.asarray(H_np, np.float64)
    iL64 = np.linalg.inv(L64)
    XT64 = np.asarray(XT, np.float64)
    yy_ref = L64 @ XT64
    xim_ref = yy_ref / (_BIAS + (H64 @ iL64) @ yy_ref)

    assert np.allclose(np.asarray(yy_b), yy_ref, atol=1e-5, rtol=1e-4)
    assert np.allclose(np.asarray(xim_b), xim_ref, atol=1e-5, rtol=1e-4)

    # Single-vector (module-semantics) path: x (16,) -> yy, xim (16, 1).
    x0 = X[0]
    yy0, xim0 = layer2_forward(A, x0)
    jax.block_until_ready((yy0, xim0))
    assert yy0.shape == (_D, 1) and xim0.shape == (_D, 1)
    assert np.allclose(np.asarray(yy0)[:, 0], yy_ref[:, 0], atol=1e-5, rtol=1e-4)
    assert np.allclose(np.asarray(xim0)[:, 0], xim_ref[:, 0], atol=1e-5, rtol=1e-4)

    print("KERNEL_OK")
</pallas_src>

<mosaic_0001>
module attributes {stable_mosaic.version = 11 : i64} {
  func.func @layer2_kernel(%arg0: i32, %arg1: memref<32x16xf32, #tpu.memory_space<vmem>>, %arg2: memref<16x256xf32, #tpu.memory_space<vmem>>, %arg3: memref<16x256xf32, #tpu.memory_space<vmem>>, %arg4: memref<16x256xf32, #tpu.memory_space<vmem>>) attributes {dimension_semantics = [#tpu.dimension_semantics<parallel>], iteration_bounds = array<i64: 2>, scalar_prefetch = 0 : i64, scratch_operands = 0 : i64, tpu.core_type = #tpu.core_type<tc>, window_params = [{pipeline_mode = #tpu.pipeline_mode<synchronous>, transform_indices = @transform_0, window_bounds = array<i64: 32, 16>}, {transform_indices = @transform_1, window_bounds = array<i64: 16, 256>}, {transform_indices = @transform_2, window_bounds = array<i64: 16, 256>}, {transform_indices = @transform_3, window_bounds = array<i64: 16, 256>}]} {
    %c0 = arith.constant 0 : index
    %c0_0 = arith.constant 0 : index
    %0 = vector.load %arg1[%c0, %c0_0] : memref<32x16xf32, #tpu.memory_space<vmem>>, vector<32x16xf32>
    %c0_1 = arith.constant 0 : index
    %c0_2 = arith.constant 0 : index
    %1 = vector.load %arg2[%c0_1, %c0_2] : memref<16x256xf32, #tpu.memory_space<vmem>>, vector<16x256xf32>
    %cst = arith.constant dense<0.000000e+00> : vector<32x256xf32>
    %2 = tpu.matmul %0, %1, %cst {dimension_numbers = #tpu.dot_dimension_numbers<[1], [0], [0], [1], [0, 0, 1, 1], [], []>} : vector<32x16xf32>, vector<16x256xf32>, vector<32x256xf32> -> vector<32x256xf32>
    %3 = vector.extract_strided_slice %2 {offsets = [0, 0], sizes = [16, 256], strides = [1, 1]} : vector<32x256xf32> to vector<16x256xf32>
    %4 = vector.extract_strided_slice %2 {offsets = [16, 0], sizes = [16, 256], strides = [1, 1]} : vector<32x256xf32> to vector<16x256xf32>
    %cst_3 = arith.constant 3.000000e+01 : f32
    %5 = vector.broadcast %cst_3 : f32 to vector<16x256xf32>
    %6 = arith.addf %5, %4 : vector<16x256xf32>
    %7 = tpu.reciprocal %6 : vector<16x256xf32> -> vector<16x256xf32>
    %8 = arith.mulf %3, %7 : vector<16x256xf32>
    %c0_4 = arith.constant 0 : index
    %c0_5 = arith.constant 0 : index
    %9 = vector.load %arg3[%c0_4, %c0_5] : memref<16x256xf32, #tpu.memory_space<vmem>>, vector<16x256xf32>
    tpu.vector_store %arg3[%c0_4, %c0_5], %3 {strides = array<i32>} : memref<16x256xf32, #tpu.memory_space<vmem>>, vector<16x256xf32>,
    %c0_6 = arith.constant 0 : index
    %c0_7 = arith.constant 0 : index
    %10 = vector.load %arg4[%c0_6, %c0_7] : memref<16x256xf32, #tpu.memory_space<vmem>>, vector<16x256xf32>
    tpu.vector_store %arg4[%c0_6, %c0_7], %8 {strides = array<i32>} : memref<16x256xf32, #tpu.memory_space<vmem>>, vector<16x256xf32>,
    return
  }
  func.func @transform_0(%arg0: i32) -> (i32, i32) {
    %c0_i32 = arith.constant 0 : i32
    %c0_i32_0 = arith.constant 0 : i32
    %c0_i32_1 = arith.constant 0 : i32
    return %c0_i32, %c0_i32_0 : i32, i32
  }
  func.func @transform_1(%arg0: i32) -> (i32, i32) {
    %c0_i32 = arith.constant 0 : i32
    %c0_i32_0 = arith.constant 0 : i32
    return %c0_i32, %arg0 : i32, i32
  }
  func.func @transform_2(%arg0: i32) -> (i32, i32) {
    %c0_i32 = arith.constant 0 : i32
    %c0_i32_0 = arith.constant 0 : i32
    return %c0_i32, %arg0 : i32, i32
  }
  func.func @transform_3(%arg0: i32) -> (i32, i32) {
    %c0_i32 = arith.constant 0 : i32
    %c0_i32_0 = arith.constant 0 : i32
    return %c0_i32, %arg0 : i32, i32
  }
}

</mosaic_0001>

<bundles_post_ra>
// kernel: tpu_custom_call.1
= control target key start
LH: loop header
LB: loop body
LE: loop exit
PB: predicated region body
PF: predicated region fallthrough
CT: control target
= control target key end

     0   :  { %9 = vsyncpa [#allocation3], 0  ;;  %s952_s0 = inlined_call_operand.vmem [shape: f32[32,16], index: 0, kind: input, shape index: {}]   ;;  %s953_s1 = inlined_call_operand.hbm [shape: f32[16,512], index: 1, kind: input, shape index: {}]   ;;  %s954_s2 = inlined_call_operand.hbm [shape: f32[16,512], index: 2, kind: output, shape index: {0}]   ;;  %s955_s3 = inlined_call_operand.hbm [shape: f32[16,512], index: 3, kind: output, shape index: {1}]  }
   0x1   :  { %11 = vsyncpa [#allocation3 + $0x1], 0 }
   0x2   :  { %12 = vsyncpa [#allocation4], 0 }
   0x3   :  { %14 = vsyncpa [#allocation4 + $0x1], 0 }
   0x4   :  { %15 = vsyncpa [#allocation7], 0 }
   0x5   :  { %17 = vsyncpa [#allocation7 + $0x1], 0  ;;  %s730_s12 = smov 0   ;;  %s732_s13 = smov 0  }
   0x6   :  { %s734_s14 = smov 0   ;;  %s736_s15 = smov 0  }
   0x7 LB: > { %s751_s16 = sadd.s32 4294967295, %s698_s15   ;;  %s473_s17 = sadd.s32 4294967294, %s698_s15   ;;  %s698_s15 = sphi %s736_s15, %s969_s15   ;;  %s694_s14 = sphi %s734_s14, %s968_s14   ;;  %s690_s13 = sphi %s732_s13, %s967_s13   ;;  %s686_s12 = sphi %s730_s12, %s966_s12  }
   0x8   : > { %s755_s18 = sadd.s32 1, %s698_s15   ;;  %s51_s19 = sadd.s32 1, %s694_s14 }
   0x9   : > { %s48_s20 = ssub.s32 %s698_s15, %s755_s18  ;;  %p58_p0 = scmp.ne.s32.totalorder %s694_s14, %s690_s13 }
   0xa   : > { %p49_p1 = scmp.eq.s32.totalorder %s48_s20, 0  ;;  %p59_p2 = scmp.eq.s32.totalorder %s698_s15, 0 }
   0xb   : > { %p64_p3 = scmp.ne.s32.totalorder %s690_s13, %s686_s12  ;;  %p65_p4 = scmp.eq.s32.totalorder %s751_s16, 0 }
   0xc   : > { %s767_s21 = scalar_select %p49_p1, %s694_s14, %s51_s19  }
   0xd   : > { %p769_p5 = por %p59_p2, %p58_p0  ;;  %p773_p6 = por %p65_p4, %p64_p3 }
   0xe   : > { %p88_p7 = scmp.eq.s32.totalorder %s751_s16, 1  ;;  %p94_p8 = scmp.eq.s32.totalorder %s473_s17, 1 }
   0xf   : > { %p521_p10 = scmp.lt.s32.totalorder %s698_s15, 2  ;;  %s143_s26 = sand.u32 1, %s694_s14  }
  0x10   : > { %p780_p11 = por %p88_p7, %p58_p0  ;;  %p784_p12 = por %p94_p8, %p64_p3 }
  0x11   : > { %s495_s27 = sshll.u32 %s698_s15, 8  ;;  %s476_s28 = sshll.u32 %s143_s26, 5 }
  0x12   : > { %s959_s24 = scalar_select %p780_p11, 1, 0 }
  0x13   : > { %s960_s25 = scalar_select %p784_p12, 1, 0 }
  0x14   : > { %s793_s4 = scalar_lea.hbm %s953_s1, %s495_s27  ;;  %s147_s5 = scalar_lea.vmem [#allocation2], %s476_s28 }
  0x15   : > { %s154_s6 = sshll.u32 %s147_s5, 4  ;;  %p797_p13 = pnand %p521_p10, %p769_p5  ;;  %s801_s6 = int_to_ptr.vmem [resolvable:$true] %s154_s6 }
  0x16   : > { %s804_s8 = scalar_lea.sflag [#allocation3], %s143_s26  ;;  %s570_s9 = scalar_lea.hbm %s793_s4, 512 }
  0x17   : > { %p571_p1 = scmp.ne.s32.totalorder %s793_s4, %s570_s9  ;;  %p572_p2 = pneg %p797_p13 }
  0x18   : > { %s575_s17 = scalar_lea.hbm %s953_s1, 1024  ;;  %p576_p5 = scmp.lt.u32.totalorder %s793_s4, %s953_s1 }
  0x19   : > { %p573_p3 = pnand %p572_p2, %p571_p1  ;;  %p577_p7 = scmp.lt.u32.totalorder %s575_s17, %s570_s9 }
  0x1a   : > { %p579_p10 = scmp.lt.u32.totalorder %s570_s9, %s793_s4 }
  0x1b   : > { %p574_p4 = pneg %p573_p3  ;;  %p578_p8 = por %p577_p7, %p576_p5 }
  0x1d   : > { %p580_p9 = por %p579_p10, %p578_p8 }
  0x1f   : > { %p581_p0 = pnand %p580_p9, %p574_p4 }
  0x21   : > { %584 = shalt.err (!%p581_p0)
}
  0x22   : > { %s585_s22 = scalar_lea.vmem %s801_s6, 512  ;;  %s700_s26 = smov [#allocation2]  }
  0x23   : > { %p586_p1 = scmp.ne.s32.totalorder %s801_s6, %s585_s22  ;;  %s590_s27 = sshll.u32 %s700_s26, 4  ;;  %s591_s27 = int_to_ptr.vmem [resolvable:$false] %s590_s27 }
  0x24   : > { %s592_s28 = scalar_lea.vmem %s591_s27, 1024  ;;  %p593_p11 = scmp.lt.s32.totalorder %s801_s6, %s591_s27 }
  0x25   : > { %p588_p3 = pnand %p586_p1, %p572_p2  ;;  %p594_p5 = scmp.lt.s32.totalorder %s592_s28, %s585_s22 }
  0x27   : > { %p589_p12 = pneg %p588_p3  ;;  %p595_p7 = por %p594_p5, %p593_p11 }
  0x29   : > { %p596_p8 = pnand %p595_p7, %p589_p12 }
  0x2b   : > { %599 = shalt.err (!%p596_p8)
}
  0x2c   : > { %s701_s29 = smov 512   ;;  %s702_s30 = smov 256  }
  0x2d   : > { %s703_s5 = smov 16   ;;  %p162_p9 = scmp.lt.s32.totalorder %s698_s15, 3 }
  0x2e   : > { %513 = dma.hbm_to_vmem [thread:$0]  (!%p797_p13), %s793_s4, 512, %s801_s6, %s804_s8, %s701_s29, %s702_s30, %s703_s5  }
  0x2f   : > { %p962_p0 = scmp.ge.s32.totalorder %s698_s15, 1 }
  0x31   : > { %p163_p2 = pnand %p962_p0, %p162_p9 }
  0x32   : > { %s836_s9 = sand.u32 (!%p163_p2), 1, %s690_s13  }
  0x33   : > { %166 = sbr.rel (%p163_p2) target bundleno = 324 (0x144), region = 28  ;;  %s839_s10 = sshll.u32 (!%p163_p2), %s836_s9, 5 }
  0x34   : > { %s169_s11 = scalar_lea.sflag (!%p163_p2), [#allocation3], %s836_s9  ;;  %s172_s17 = scalar_lea.vmem (!%p163_p2), [#allocation2], %s839_s10 }
  0x3a   : > { %673 = dma.done.wait (%p773_p6), %s169_s11, 512  }
  0x3b   : > { %675 = vsyncadd (%p773_p6), %s169_s11, 4294966784  ;;  %v704_v0 = vmov 0.0   ;;  %v208_v1 = vld [vmem:[%s172_s17 + $0x8] sm:$0xff]  ;;  %v210_v2 = vld [vmem:[%s172_s17 + $0x18] sm:$0xff]  ;;  %vm211_vm0 = vcmask 130048   ;;  %s192_s26 = scalar_lea.vmem [#allocation5], %s839_s10 }
  0x3c   : > { %300 = vmatprep.mubr.f32.mxu1 %v704_v0  ;;  %288 = vmatprep.mubr.f32.mxu0 %v704_v0  ;;  %v207_v3 = vld [vmem:[%s172_s17] sm:$0xff]  ;;  %v498_v4 = vpack.c.bf16 %v210_v2, %v208_v1  ;;  %v209_v5 = vld [vmem:[%s172_s17 + $0x10] sm:$0xff]  ;;  %v206_v9 = vld [vmem:[%s952_s0 + $0x18] sm:$0xff]  ;;  %s352_s27 = sshll.u32 %s192_s26, 4  ;;  %s496_s28 = sshll.u32 %s751_s16, 8  ;;  %s861_s27 = int_to_ptr.vmem [resolvable:$true] %s352_s27 }
  0x3d   : > { %v500_v6 = vpack.c.bf16 %v209_v5, %v207_v3  ;;  %v205_v7 = vld [vmem:[%s952_s0 + $0x10] sm:$0xff]  ;;  %v203_v8 = vld [vmem:[%s952_s0] sm:$0xff]  ;;  %v204_v10 = vld [vmem:[%s952_s0 + $0x8] sm:$0xff]  ;;  %s868_s5 = scalar_lea.hbm %s954_s2, %s496_s28  ;;  %s334_s11 = scalar_lea.sflag [#allocation4], %s836_s9 }
  0x3e   : > { %502 = vmatprep.subr.bf16.mxu1 %v498_v4  ;;  %499 = vmatprep.subr.bf16.mxu0 %v498_v4  ;;  %s600_s17 = scalar_lea.vmem %s861_s27, 512  ;;  %p963_p11 = scmp.ne.s32.totalorder %s959_s24, 0 }
  0x3f   : > { %503 = vmatpush1.bf16.msra.mxu1 %v500_v6  ;;  %501 = vmatpush1.bf16.msra.mxu0 %v500_v6  ;;  %p601_p6 = scmp.ne.s32.totalorder %s861_s27, %s600_s17  ;;  %s705_s4 = smov [#allocation5]  }
  0x40   : > { %s604_s6 = sshll.u32 %s705_s4, 4  ;;  %s605_s6 = int_to_ptr.vmem [resolvable:$false] %s604_s6 }
  0x41   : > { %p602_p12 = pnand %p601_p6, %p963_p11  ;;  %s606_s23 = scalar_lea.vmem %s605_s6, 1024 }
  0x42   : > { %485 = vmatmul.mubr.msk.f32.vlgmr.msra.gmra.mrb[0].mxu1 %vm211_vm0, %v205_v7  ;;  %483 = vmatmul.mubr.msk.f32.vlgmr.msra.gmra.mrb[0].mxu0 %vm211_vm0, %v203_v8  ;;  %p607_p4 = scmp.lt.s32.totalorder %s861_s27, %s605_s6  ;;  %p608_p10 = scmp.lt.s32.totalorder %s606_s23, %s600_s17 }
  0x43   : > { %306 = vmatprep.mubr.f32.mxu1 %v704_v0  ;;  %294 = vmatprep.mubr.f32.mxu0 %v704_v0  ;;  %p603_p13 = pneg %p602_p12 }
  0x44   : > { %p609_p1 = por %p608_p10, %p607_p4 }
  0x46   : > { %486 = vmatmul.mubr.msk.f32.gmra.mrb[2].mxu1 %vm211_vm0, %v206_v9  ;;  %484 = vmatmul.mubr.msk.f32.gmra.mrb[2].mxu0 %vm211_vm0, %v204_v10  ;;  %p610_p3 = pnand %p609_p1, %p603_p13 }
 0x115   : > { %v302_v11 = vpop.f32.mrb[0].mxu1  ;;  %v290_v12 = vpop.f32.mrb[0].mxu0 }
 0x116   : > { %v313_v13 = vadd.f32 30.0, %v302_v11  ;;  %v304_v14 = vpop.f32.mrb[1].mxu1  ;;  %325 = vst [vmem:[%s192_s26] sm:$0xff] %v290_v12  ;;  %v292_v15 = vpop.f32.mrb[1].mxu0 }
 0x117   : > { %v314_v16 = vadd.f32 30.0, %v304_v14  ;;  %326 = vst [vmem:[%s192_s26 + $0x8] sm:$0xff] %v292_v15 }
 0x118   : > { %562 = vrcp.f32 %v313_v13 }
 0x119   : > { %564 = vrcp.f32 %v314_v16  ;;  %v308_v17 = vpop.f32.mrb[2].mxu1  ;;  %v296_v18 = vpop.f32.mrb[2].mxu0 }
 0x11a   : > { %v315_v19 = vadd.f32 30.0, %v308_v17  ;;  %v310_v20 = vpop.f32.mrb[3].mxu1  ;;  %327 = vst [vmem:[%s192_s26 + $0x10] sm:$0xff] %v296_v18  ;;  %v298_v21 = vpop.f32.mrb[3].mxu0 }
 0x11b   : > { %v316_v22 = vadd.f32 30.0, %v310_v20  ;;  %328 = vst [vmem:[%s192_s26 + $0x18] sm:$0xff] %v298_v21 }
 0x11c   : > { %566 = vrcp.f32 %v315_v19 }
 0x11d   : > { %613 = shalt.err (!%p610_p3)
}
 0x11e   : > { %s614_s7 = scalar_lea.hbm %s868_s5, 512  ;;  %s618_s20 = scalar_lea.hbm %s954_s2, 1024 }
 0x11f   : > { %p615_p5 = scmp.ne.s32.totalorder %s868_s5, %s614_s7  ;;  %p619_p9 = scmp.lt.u32.totalorder %s868_s5, %s954_s2 }
 0x120   : > { %p620_p0 = scmp.lt.u32.totalorder %s618_s20, %s614_s7  ;;  %p622_p6 = scmp.lt.u32.totalorder %s614_s7, %s868_s5 }
 0x121   : > { %p616_p7 = pnand %p615_p5, %p963_p11 }
 0x122   : > { %p621_p2 = por %p620_p0, %p619_p9 }
 0x123   : > { %p617_p8 = pneg %p616_p7 }
 0x124   : > { %p623_p12 = por %p622_p6, %p621_p2 }
 0x126   : > { %p624_p13 = pnand %p623_p12, %p617_p8 }
 0x128   : > { %627 = shalt.err (!%p624_p13)
}
 0x129   : > { %s706_s29 = smov 256   ;;  %s707_s30 = smov 512   ;;  %568 = vrcp.f32 %v316_v22  ;;  %v563_v23 = vpop.eup %562 }
 0x12a   : > { %s708_s17 = smov 16   ;;  %v565_v24 = vpop.eup %564  ;;  %v321_v25 = vmul.f32 %v563_v23, %v290_v12  ;;  %s199_s4 = scalar_lea.vmem [#allocation6], %s839_s10 }
 0x12b   : > { %506 = dma.vmem_to_hbm [thread:$0]  (%p963_p11), %s861_s27, 512, %s868_s5, %s334_s11, %s706_s29, %s707_s30, %s708_s17   ;;  %v322_v26 = vmul.f32 %v565_v24, %v292_v15  ;;  %v567_v27 = vpop.eup %566 }
 0x12c   : > { %s368_s6 = sshll.u32 %s199_s4, 4  ;;  %329 = vst [vmem:[%s199_s4] sm:$0xff] %v321_v25  ;;  %v323_v29 = vmul.f32 %v567_v27, %v296_v18  ;;  %s905_s11 = scalar_lea.hbm %s955_s3, %s496_s28  ;;  %s898_s6 = int_to_ptr.vmem [resolvable:$true] %s368_s6 }
 0x12d   : > { %330 = vst [vmem:[%s199_s4 + $0x8] sm:$0xff] %v322_v26  ;;  %s339_s10 = scalar_lea.sflag [#allocation7], %s836_s9  ;;  %s628_s23 = scalar_lea.vmem %s898_s6, 512 }
 0x12e   : > { %331 = vst [vmem:[%s199_s4 + $0x10] sm:$0xff] %v323_v29  ;;  %p629_p4 = scmp.ne.s32.totalorder %s898_s6, %s628_s23  ;;  %s709_s7 = smov [#allocation6]  }
 0x12f   : > { %s632_s8 = sshll.u32 %s709_s7, 4  ;;  %s633_s8 = int_to_ptr.vmem [resolvable:$false] %s632_s8 }
 0x130   : > { %p630_p10 = pnand %p629_p4, %p963_p11  ;;  %s634_s19 = scalar_lea.vmem %s633_s8, 1024 }
 0x131   : > { %p635_p3 = scmp.lt.s32.totalorder %s898_s6, %s633_s8  ;;  %p636_p5 = scmp.lt.s32.totalorder %s634_s19, %s628_s23 }
 0x132   : > { %p631_p1 = pneg %p630_p10 }
 0x133   : > { %v569_v28 = vpop.eup %568  ;;  %p637_p7 = por %p636_p5, %p635_p3 }
 0x134   : > { %v324_v30 = vmul.f32 %v569_v28, %v298_v21 }
 0x135   : > { %p638_p8 = pnand %p637_p7, %p631_p1 }
 0x136   : > { %332 = vst [vmem:[%s199_s4 + $0x18] sm:$0xff] %v324_v30 }
 0x137   : > { %641 = shalt.err (!%p638_p8)
}
 0x138   : > { %s642_s16 = scalar_lea.hbm %s905_s11, 512  ;;  %s646_s22 = scalar_lea.hbm %s955_s3, 1024 }
 0x139   : > { %p643_p9 = scmp.ne.s32.totalorder %s905_s11, %s642_s16  ;;  %p647_p6 = scmp.lt.u32.totalorder %s905_s11, %s955_s3 }
 0x13a   : > { %p648_p12 = scmp.lt.u32.totalorder %s646_s22, %s642_s16  ;;  %p650_p4 = scmp.lt.u32.totalorder %s642_s16, %s905_s11 }
 0x13b   : > { %p644_p0 = pnand %p643_p9, %p963_p11 }
 0x13c   : > { %p649_p13 = por %p648_p12, %p647_p6 }
 0x13d   : > { %p645_p2 = pneg %p644_p0 }
 0x13e   : > { %p651_p10 = por %p650_p4, %p649_p13 }
 0x140   : > { %p652_p1 = pnand %p651_p10, %p645_p2 }
 0x142   : > { %655 = shalt.err (!%p652_p1)
}
 0x143   : > { %507 = dma.vmem_to_hbm [thread:$0]  (%p963_p11), %s898_s6, 512, %s905_s11, %s339_s10, %s706_s29, %s707_s30, %s708_s17  }
 0x144 PF: > { %s383_s27 = sand.u32 1, %s686_s12   ;;  %p964_p3 = scmp.ne.s32.totalorder %s960_s25, 0 }
 0x145   : > { %p965_p5 = scmp.ge.s32.totalorder %s698_s15, 2  ;;  %s384_s5 = scalar_lea.sflag [#allocation4], %s383_s27 }
 0x147   : > { %p515_p7 = pnand %p965_p5, %p964_p3 }
 0x149   : > { %677 = dma.done.wait (!%p515_p7), %s384_s5, 512  }
 0x14a   : > { %679 = vsyncadd (!%p515_p7), %s384_s5, 4294966784  ;;  %s393_s24 = scalar_lea.sflag [#allocation7], %s383_s27 }
 0x14b   : > { %681 = dma.done.wait (!%p515_p7), %s393_s24, 512  }
 0x14c   : > { %683 = vsyncadd (!%p515_p7), %s393_s24, 4294966784  ;;  %p20_p11 = scmp.ge.s32.totalorder %s755_s18, 4   ;;  %s966_s12 = smov %s690_s13 }
 0x14d   : > { %s967_s13 = smov %s694_s14  ;;  %s968_s14 = smov %s767_s21 }
 0x14e   : > { %s969_s15 = smov %s755_s18  ;;  %22 = sbr.rel (!%p20_p11) target bundleno = 7 (0x7), region = 90 }
 0x155   :  { %398 = vsyncpa [#allocation3], 1 }
 0x156   :  { %400 = vsyncpa [#allocation3 + $0x1], 1 }
 0x157   :  { %401 = vsyncpa [#allocation4], 1 }
 0x158   :  { %403 = vsyncpa [#allocation4 + $0x1], 1 }
 0x159   :  { %404 = vsyncpa [#allocation7], 1 }
 0x15a   :  { %406 = vsyncpa [#allocation7 + $0x1], 1 }

</bundles_post_ra>
